<compile_context>
chip_gen: v5e
topology: v5e:2x2
jax: 0.10.0
libtpu: 0.0.40
codegen_flags: <defaults>
</compile_context>

<pallas_src>
import math
import functools

import jax
import jax.numpy as jnp
from jax.experimental import pallas as pl
from jax.experimental.pallas import tpu as pltpu  # noqa: F401  (TPU target; kept for CompilerParams if a grid is reintroduced)


# ----------------------------- in-kernel helpers -----------------------------

def _erf(x):
    # Abramowitz & Stegun 7.1.26 rational approximation (|err| < 1.5e-7),
    # built only from ops with guaranteed Mosaic lowerings (exp/abs/div/where).
    a1, a2, a3, a4, a5 = (0.254829592, -0.284496736, 1.421413741,
                          -1.453152027, 1.061405429)
    p = 0.3275911
    ax = jnp.abs(x)
    t = 1.0 / (1.0 + p * ax)
    poly = ((((a5 * t + a4) * t + a3) * t + a2) * t + a1) * t
    y = 1.0 - poly * jnp.exp(-ax * ax)
    return jnp.where(x >= 0, y, -y)


def _gelu_exact(x):
    # nn.GELU() default (approximate='none'): 0.5*x*(1+erf(x/sqrt(2)))
    return 0.5 * x * (1.0 + _erf(x * (1.0 / math.sqrt(2.0))))


def _layer_norm(x, gamma, beta, eps=1e-5):
    mu = jnp.mean(x, axis=-1, keepdims=True)
    var = jnp.mean(jnp.square(x - mu), axis=-1, keepdims=True)  # biased, like torch
    return (x - mu) * jax.lax.rsqrt(var + eps) * gamma + beta


# --------------------------------- kernel ------------------------------------

def _decoder_kernel(num_head,
                    x_ref, bmask_ref,
                    ln1_g_ref, ln1_b_ref,
                    wq_ref, bq_ref, wk_ref, wv_ref, bv_ref, wo_ref, bo_ref,
                    ln2_g_ref, ln2_b_ref,
                    w1_ref, b1_ref, w2_ref, b2_ref,
                    out_ref):
    f32 = jnp.float32
    x = x_ref[...]                        # (B*S, D) -- all batches fused
    BS, D = x.shape
    d = D // num_head
    scale = 1.0 / math.sqrt(d)
    batch_mask = bmask_ref[...]           # (B*S, B*S): 0 within batch, -1e30 across

    # --- X + MHA(LayerNorm1(X)) : projections over the full (B*S, D) slab ---
    xn = _layer_norm(x, ln1_g_ref[...], ln1_b_ref[...])
    q = jnp.dot(xn, wq_ref[...], preferred_element_type=f32) + bq_ref[...]
    k = jnp.dot(xn, wk_ref[...], preferred_element_type=f32)          # wk: bias=False
    v = jnp.dot(xn, wv_ref[...], preferred_element_type=f32) + bv_ref[...]

    head_outs = []
    for h in range(num_head):                                          # static unroll
        sl = slice(h * d, (h + 1) * d)
        qh, kh, vh = q[:, sl], k[:, sl], v[:, sl]                      # (B*S, d)
        # q @ k^T without an explicit transpose: contract last dims of both.
        s = jax.lax.dot_general(qh, kh, (((1,), (1,)), ((), ())),
                                preferred_element_type=f32) * scale    # (B*S, B*S)
        s = s + batch_mask                  # block-diagonal: no cross-batch attention
        s = s - jnp.max(s, axis=-1, keepdims=True)
        e = jnp.exp(s)
        w = e * pl.reciprocal(jnp.sum(e, axis=-1, keepdims=True), approx=True)
        head_outs.append(jnp.dot(w, vh, preferred_element_type=f32))   # (B*S, d)
    attn = jnp.concatenate(head_outs, axis=-1)                         # (B*S, D)
    attn = jnp.dot(attn, wo_ref[...], preferred_element_type=f32) + bo_ref[...]
    x = x + attn

    # --- X + FFN(LayerNorm2(X)) ---
    xn2 = _layer_norm(x, ln2_g_ref[...], ln2_b_ref[...])
    h1 = jnp.dot(xn2, w1_ref[...], preferred_element_type=f32) + b1_ref[...]
    h1 = _gelu_exact(h1)
    h2 = jnp.dot(h1, w2_ref[...], preferred_element_type=f32) + b2_ref[...]
    out_ref[...] = (x + h2).astype(out_ref.dtype)


# -------------------------------- wrapper ------------------------------------

_PARAM_ORDER = ("ln1_g", "ln1_b",
                "wq_t", "bq", "wk_t", "wv_t", "bv", "wo_t", "bo",
                "ln2_g", "ln2_b",
                "w1_t", "b1", "w2_t", "b2")


def ayanami_decoder_layer(x, params, num_head, mask=None, state=None,
                          valid_lens=None):
    # TODO(synk): mask / valid_lens paths not implemented (both None in this run).
    del state
    assert mask is None and valid_lens is None
    B, S, D = x.shape
    plist = [params[name] for name in _PARAM_ORDER]

    # Additive block-diagonal mask so fused-batch attention never crosses batches.
    row_batch = jnp.arange(B * S, dtype=jnp.int32) // S
    bmask = jnp.where(row_batch[:, None] == row_batch[None, :],
                      0.0, -1e30).astype(x.dtype)

    # Single kernel invocation (no grid): all inputs/outputs are full-array
    # VMEM blocks (tiny at these shapes), weights are loaded exactly once.
    out = pl.pallas_call(
        functools.partial(_decoder_kernel, num_head),
        out_shape=jax.ShapeDtypeStruct((B * S, D), x.dtype),
    )(x.reshape(B * S, D), bmask, *plist)
    return out.reshape(B, S, D), None   # matches the torch module's (X, None) return


# ------------------------- pure-JAX reference (glue) -------------------------

def reference_forward(x, params, num_head):
    hp = jax.lax.Precision.HIGHEST
    B, S, D = x.shape
    d = D // num_head

    def ln(v, g, b):
        mu = jnp.mean(v, axis=-1, keepdims=True)
        var = jnp.mean((v - mu) ** 2, axis=-1, keepdims=True)
        return (v - mu) / jnp.sqrt(var + 1e-5) * g + b

    def split(t):  # (B,S,D) -> (B,H,S,d)
        return t.reshape(B, S, num_head, d).transpose(0, 2, 1, 3)

    xn = ln(x, params["ln1_g"], params["ln1_b"])
    q = jnp.dot(xn, params["wq_t"], precision=hp) + params["bq"]
    k = jnp.dot(xn, params["wk_t"], precision=hp)
    v = jnp.dot(xn, params["wv_t"], precision=hp) + params["bv"]
    score = jnp.einsum("bhqd,bhkd->bhqk", split(q), split(k),
                       precision=hp) / math.sqrt(d)
    w = jax.nn.softmax(score, axis=-1)
    o = jnp.einsum("bhqk,bhkd->bhqd", w, split(v), precision=hp)
    o = o.transpose(0, 2, 1, 3).reshape(B, S, D)
    x = x + jnp.dot(o, params["wo_t"], precision=hp) + params["bo"]

    xn2 = ln(x, params["ln2_g"], params["ln2_b"])
    h = jnp.dot(xn2, params["w1_t"], precision=hp) + params["b1"]
    h = jax.nn.gelu(h, approximate=False)
    x = x + jnp.dot(h, params["w2_t"], precision=hp) + params["b2"]
    return x


# ---------------------------------- main -------------------------------------

if __name__ == "__main__":
    # Small shapes consistent with the module:
    # num_hidden = q_size = k_size = v_size = ffn_num_input = ffn_num_output = 32,
    # num_head = 4, ffn_num_hidden = 64, batch = 2, seq = 8, use_lora_token=False.
    B, S, D, H, FFH = 2, 8, 32, 4, 64

    key = jax.random.PRNGKey(0)
    ks = iter(jax.random.split(key, 24))

    def rnd(shape, scale=0.05):
        return jax.random.normal(next(ks), shape, dtype=jnp.float32) * scale

    # torch-layout weights (out, in), pre-transposed to (in, out) for the kernel.
    wq = rnd((D, D)); wk = rnd((D, D)); wv = rnd((D, D)); wo = rnd((D, D))
    w1 = rnd((FFH, D)); w2 = rnd((D, FFH))

    params = {
        "ln1_g": 1.0 + rnd((1, D), 0.1), "ln1_b": rnd((1, D)),
        "wq_t": wq.T, "bq": rnd((1, D)),
        "wk_t": wk.T,                         # wk has no bias
        "wv_t": wv.T, "bv": rnd((1, D)),
        "wo_t": wo.T, "bo": rnd((1, D)),
        "ln2_g": 1.0 + rnd((1, D), 0.1), "ln2_b": rnd((1, D)),
        "w1_t": w1.T, "b1": rnd((1, FFH)),
        "w2_t": w2.T, "b2": rnd((1, D)),
    }

    x = jax.random.normal(next(ks), (B, S, D), dtype=jnp.float32)

    out, _ = ayanami_decoder_layer(x, params, num_head=H)
    out = jax.block_until_ready(out)

    ref = reference_forward(x, params, H)
    assert out.shape == (B, S, D)
    assert bool(jnp.all(jnp.isfinite(out)))
    max_err = float(jnp.max(jnp.abs(out - ref)))
    # Kernel matmuls now run at DEFAULT (single bf16-pass) MXU precision, the
    # reference at HIGHEST f32 -> allow a slightly looser tolerance than before.
    assert max_err < 5e-3, f"max abs err {max_err}"

    print("KERNEL_OK")
</pallas_src>

<mosaic_0001>
module attributes {stable_mosaic.version = 11 : i64} {
  func.func @_decoder_kernel(%arg0: memref<16x32xf32, #tpu.memory_space<vmem>>, %arg1: memref<16x16xf32, #tpu.memory_space<vmem>>, %arg2: memref<1x32xf32, #tpu.memory_space<vmem>>, %arg3: memref<1x32xf32, #tpu.memory_space<vmem>>, %arg4: memref<32x32xf32, #tpu.memory_space<vmem>>, %arg5: memref<1x32xf32, #tpu.memory_space<vmem>>, %arg6: memref<32x32xf32, #tpu.memory_space<vmem>>, %arg7: memref<32x32xf32, #tpu.memory_space<vmem>>, %arg8: memref<1x32xf32, #tpu.memory_space<vmem>>, %arg9: memref<32x32xf32, #tpu.memory_space<vmem>>, %arg10: memref<1x32xf32, #tpu.memory_space<vmem>>, %arg11: memref<1x32xf32, #tpu.memory_space<vmem>>, %arg12: memref<1x32xf32, #tpu.memory_space<vmem>>, %arg13: memref<32x64xf32, #tpu.memory_space<vmem>>, %arg14: memref<1x64xf32, #tpu.memory_space<vmem>>, %arg15: memref<64x32xf32, #tpu.memory_space<vmem>>, %arg16: memref<1x32xf32, #tpu.memory_space<vmem>>, %arg17: memref<16x32xf32, #tpu.memory_space<vmem>>) attributes {dimension_semantics = [], scalar_prefetch = 0 : i64, scratch_operands = 0 : i64, tpu.core_type = #tpu.core_type<tc>} {
    %c0 = arith.constant 0 : index
    %c0_0 = arith.constant 0 : index
    %0 = vector.load %arg0[%c0, %c0_0] : memref<16x32xf32, #tpu.memory_space<vmem>>, vector<16x32xf32>
    %c0_1 = arith.constant 0 : index
    %c0_2 = arith.constant 0 : index
    %1 = vector.load %arg1[%c0_1, %c0_2] : memref<16x16xf32, #tpu.memory_space<vmem>>, vector<16x16xf32>
    %c0_3 = arith.constant 0 : index
    %c0_4 = arith.constant 0 : index
    %2 = vector.load %arg2[%c0_3, %c0_4] : memref<1x32xf32, #tpu.memory_space<vmem>>, vector<1x32xf32>
    %c0_5 = arith.constant 0 : index
    %c0_6 = arith.constant 0 : index
    %3 = vector.load %arg3[%c0_5, %c0_6] : memref<1x32xf32, #tpu.memory_space<vmem>>, vector<1x32xf32>
    %cst = arith.constant dense<0.000000e+00> : vector<16xf32>
    %4 = vector.multi_reduction <add>, %0, %cst [1] : vector<16x32xf32> to vector<16xf32>
    %5 = vector.shape_cast %4 : vector<16xf32> to vector<16x1xf32>
    %cst_7 = arith.constant 3.200000e+01 : f32
    %6 = vector.broadcast %cst_7 : f32 to vector<16x1xf32>
    %7 = arith.divf %5, %6 : vector<16x1xf32>
    %8 = vector.broadcast %7 : vector<16x1xf32> to vector<16x32xf32>
    %9 = arith.subf %0, %8 : vector<16x32xf32>
    %10 = arith.mulf %9, %9 : vector<16x32xf32>
    %cst_8 = arith.constant dense<0.000000e+00> : vector<16xf32>
    %11 = vector.multi_reduction <add>, %10, %cst_8 [1] : vector<16x32xf32> to vector<16xf32>
    %12 = vector.shape_cast %11 : vector<16xf32> to vector<16x1xf32>
    %cst_9 = arith.constant 3.200000e+01 : f32
    %13 = vector.broadcast %cst_9 : f32 to vector<16x1xf32>
    %14 = arith.divf %12, %13 : vector<16x1xf32>
    %15 = vector.broadcast %7 : vector<16x1xf32> to vector<16x32xf32>
    %16 = arith.subf %0, %15 : vector<16x32xf32>
    %cst_10 = arith.constant 9.99999974E-6 : f32
    %17 = vector.broadcast %cst_10 : f32 to vector<16x1xf32>
    %18 = arith.addf %14, %17 : vector<16x1xf32>
    %19 = math.rsqrt %18 : vector<16x1xf32>
    %20 = vector.broadcast %19 : vector<16x1xf32> to vector<16x32xf32>
    %21 = arith.mulf %16, %20 : vector<16x32xf32>
    %22 = vector.broadcast %2 : vector<1x32xf32> to vector<16x32xf32>
    %23 = arith.mulf %21, %22 : vector<16x32xf32>
    %24 = vector.broadcast %3 : vector<1x32xf32> to vector<16x32xf32>
    %25 = arith.addf %23, %24 : vector<16x32xf32>
    %c0_11 = arith.constant 0 : index
    %c0_12 = arith.constant 0 : index
    %26 = vector.load %arg4[%c0_11, %c0_12] : memref<32x32xf32, #tpu.memory_space<vmem>>, vector<32x32xf32>
    %cst_13 = arith.constant dense<0.000000e+00> : vector<16x32xf32>
    %27 = tpu.matmul %25, %26, %cst_13 {dimension_numbers = #tpu.dot_dimension_numbers<[1], [0], [0], [1], [0, 0, 1, 1], [], []>} : vector<16x32xf32>, vector<32x32xf32>, vector<16x32xf32> -> vector<16x32xf32>
    %c0_14 = arith.constant 0 : index
    %c0_15 = arith.constant 0 : index
    %28 = vector.load %arg5[%c0_14, %c0_15] : memref<1x32xf32, #tpu.memory_space<vmem>>, vector<1x32xf32>
    %29 = vector.broadcast %28 : vector<1x32xf32> to vector<16x32xf32>
    %30 = arith.addf %27, %29 : vector<16x32xf32>
    %c0_16 = arith.constant 0 : index
    %c0_17 = arith.constant 0 : index
    %31 = vector.load %arg6[%c0_16, %c0_17] : memref<32x32xf32, #tpu.memory_space<vmem>>, vector<32x32xf32>
    %cst_18 = arith.constant dense<0.000000e+00> : vector<16x32xf32>
    %32 = tpu.matmul %25, %31, %cst_18 {dimension_numbers = #tpu.dot_dimension_numbers<[1], [0], [0], [1], [0, 0, 1, 1], [], []>} : vector<16x32xf32>, vector<32x32xf32>, vector<16x32xf32> -> vector<16x32xf32>
    %c0_19 = arith.constant 0 : index
    %c0_20 = arith.constant 0 : index
    %33 = vector.load %arg7[%c0_19, %c0_20] : memref<32x32xf32, #tpu.memory_space<vmem>>, vector<32x32xf32>
    %cst_21 = arith.constant dense<0.000000e+00> : vector<16x32xf32>
    %34 = tpu.matmul %25, %33, %cst_21 {dimension_numbers = #tpu.dot_dimension_numbers<[1], [0], [0], [1], [0, 0, 1, 1], [], []>} : vector<16x32xf32>, vector<32x32xf32>, vector<16x32xf32> -> vector<16x32xf32>
    %c0_22 = arith.constant 0 : index
    %c0_23 = arith.constant 0 : index
    %35 = vector.load %arg8[%c0_22, %c0_23] : memref<1x32xf32, #tpu.memory_space<vmem>>, vector<1x32xf32>
    %36 = vector.broadcast %35 : vector<1x32xf32> to vector<16x32xf32>
    %37 = arith.addf %34, %36 : vector<16x32xf32>
    %38 = vector.extract_strided_slice %30 {offsets = [0, 0], sizes = [16, 8], strides = [1, 1]} : vector<16x32xf32> to vector<16x8xf32>
    %39 = vector.extract_strided_slice %32 {offsets = [0, 0], sizes = [16, 8], strides = [1, 1]} : vector<16x32xf32> to vector<16x8xf32>
    %40 = vector.extract_strided_slice %37 {offsets = [0, 0], sizes = [16, 8], strides = [1, 1]} : vector<16x32xf32> to vector<16x8xf32>
    %cst_24 = arith.constant dense<0.000000e+00> : vector<16x16xf32>
    %41 = tpu.matmul %38, %39, %cst_24 {dimension_numbers = #tpu.dot_dimension_numbers<[1], [1], [0], [0], [0, 0, 1, 0], [], []>} : vector<16x8xf32>, vector<16x8xf32>, vector<16x16xf32> -> vector<16x16xf32>
    %cst_25 = arith.constant 0.353553385 : f32
    %42 = vector.broadcast %cst_25 : f32 to vector<16x16xf32>
    %43 = arith.mulf %41, %42 : vector<16x16xf32>
    %44 = arith.addf %43, %1 : vector<16x16xf32>
    %cst_26 = arith.constant dense<0xFF800000> : vector<16xf32>
    %45 = vector.multi_reduction <maximumf>, %44, %cst_26 [1] : vector<16x16xf32> to vector<16xf32>
    %46 = vector.shape_cast %45 : vector<16xf32> to vector<16x1xf32>
    %47 = vector.broadcast %46 : vector<16x1xf32> to vector<16x16xf32>
    %48 = arith.subf %44, %47 : vector<16x16xf32>
    %49 = math.exp %48 : vector<16x16xf32>
    %cst_27 = arith.constant dense<0.000000e+00> : vector<16xf32>
    %50 = vector.multi_reduction <add>, %49, %cst_27 [1] : vector<16x16xf32> to vector<16xf32>
    %51 = vector.shape_cast %50 : vector<16xf32> to vector<16x1xf32>
    %52 = tpu.reciprocal %51 {approx = true} : vector<16x1xf32> -> vector<16x1xf32>
    %53 = vector.broadcast %52 : vector<16x1xf32> to vector<16x16xf32>
    %54 = arith.mulf %49, %53 : vector<16x16xf32>
    %cst_28 = arith.constant dense<0.000000e+00> : vector<16x8xf32>
    %55 = tpu.matmul %54, %40, %cst_28 {dimension_numbers = #tpu.dot_dimension_numbers<[1], [0], [0], [1], [0, 0, 1, 1], [], []>} : vector<16x16xf32>, vector<16x8xf32>, vector<16x8xf32> -> vector<16x8xf32>
    %56 = vector.extract_strided_slice %30 {offsets = [0, 8], sizes = [16, 8], strides = [1, 1]} : vector<16x32xf32> to vector<16x8xf32>
    %57 = vector.extract_strided_slice %32 {offsets = [0, 8], sizes = [16, 8], strides = [1, 1]} : vector<16x32xf32> to vector<16x8xf32>
    %58 = vector.extract_strided_slice %37 {offsets = [0, 8], sizes = [16, 8], strides = [1, 1]} : vector<16x32xf32> to vector<16x8xf32>
    %cst_29 = arith.constant dense<0.000000e+00> : vector<16x16xf32>
    %59 = tpu.matmul %56, %57, %cst_29 {dimension_numbers = #tpu.dot_dimension_numbers<[1], [1], [0], [0], [0, 0, 1, 0], [], []>} : vector<16x8xf32>, vector<16x8xf32>, vector<16x16xf32> -> vector<16x16xf32>
    %cst_30 = arith.constant 0.353553385 : f32
    %60 = vector.broadcast %cst_30 : f32 to vector<16x16xf32>
    %61 = arith.mulf %59, %60 : vector<16x16xf32>
    %62 = arith.addf %61, %1 : vector<16x16xf32>
    %cst_31 = arith.constant dense<0xFF800000> : vector<16xf32>
    %63 = vector.multi_reduction <maximumf>, %62, %cst_31 [1] : vector<16x16xf32> to vector<16xf32>
    %64 = vector.shape_cast %63 : vector<16xf32> to vector<16x1xf32>
    %65 = vector.broadcast %64 : vector<16x1xf32> to vector<16x16xf32>
    %66 = arith.subf %62, %65 : vector<16x16xf32>
    %67 = math.exp %66 : vector<16x16xf32>
    %cst_32 = arith.constant dense<0.000000e+00> : vector<16xf32>
    %68 = vector.multi_reduction <add>, %67, %cst_32 [1] : vector<16x16xf32> to vector<16xf32>
    %69 = vector.shape_cast %68 : vector<16xf32> to vector<16x1xf32>
    %70 = tpu.reciprocal %69 {approx = true} : vector<16x1xf32> -> vector<16x1xf32>
    %71 = vector.broadcast %70 : vector<16x1xf32> to vector<16x16xf32>
    %72 = arith.mulf %67, %71 : vector<16x16xf32>
    %cst_33 = arith.constant dense<0.000000e+00> : vector<16x8xf32>
    %73 = tpu.matmul %72, %58, %cst_33 {dimension_numbers = #tpu.dot_dimension_numbers<[1], [0], [0], [1], [0, 0, 1, 1], [], []>} : vector<16x16xf32>, vector<16x8xf32>, vector<16x8xf32> -> vector<16x8xf32>
    %74 = vector.extract_strided_slice %30 {offsets = [0, 16], sizes = [16, 8], strides = [1, 1]} : vector<16x32xf32> to vector<16x8xf32>
    %75 = vector.extract_strided_slice %32 {offsets = [0, 16], sizes = [16, 8], strides = [1, 1]} : vector<16x32xf32> to vector<16x8xf32>
    %76 = vector.extract_strided_slice %37 {offsets = [0, 16], sizes = [16, 8], strides = [1, 1]} : vector<16x32xf32> to vector<16x8xf32>
    %cst_34 = arith.constant dense<0.000000e+00> : vector<16x16xf32>
    %77 = tpu.matmul %74, %75, %cst_34 {dimension_numbers = #tpu.dot_dimension_numbers<[1], [1], [0], [0], [0, 0, 1, 0], [], []>} : vector<16x8xf32>, vector<16x8xf32>, vector<16x16xf32> -> vector<16x16xf32>
    %cst_35 = arith.constant 0.353553385 : f32
    %78 = vector.broadcast %cst_35 : f32 to vector<16x16xf32>
    %79 = arith.mulf %77, %78 : vector<16x16xf32>
    %80 = arith.addf %79, %1 : vector<16x16xf32>
    %cst_36 = arith.constant dense<0xFF800000> : vector<16xf32>
    %81 = vector.multi_reduction <maximumf>, %80, %cst_36 [1] : vector<16x16xf32> to vector<16xf32>
    %82 = vector.shape_cast %81 : vector<16xf32> to vector<16x1xf32>
    %83 = vector.broadcast %82 : vector<16x1xf32> to vector<16x16xf32>
    %84 = arith.subf %80, %83 : vector<16x16xf32>
    %85 = math.exp %84 : vector<16x16xf32>
    %cst_37 = arith.constant dense<0.000000e+00> : vector<16xf32>
    %86 = vector.multi_reduction <add>, %85, %cst_37 [1] : vector<16x16xf32> to vector<16xf32>
    %87 = vector.shape_cast %86 : vector<16xf32> to vector<16x1xf32>
    %88 = tpu.reciprocal %87 {approx = true} : vector<16x1xf32> -> vector<16x1xf32>
    %89 = vector.broadcast %88 : vector<16x1xf32> to vector<16x16xf32>
    %90 = arith.mulf %85, %89 : vector<16x16xf32>
    %cst_38 = arith.constant dense<0.000000e+00> : vector<16x8xf32>
    %91 = tpu.matmul %90, %76, %cst_38 {dimension_numbers = #tpu.dot_dimension_numbers<[1], [0], [0], [1], [0, 0, 1, 1], [], []>} : vector<16x16xf32>, vector<16x8xf32>, vector<16x8xf32> -> vector<16x8xf32>
    %92 = vector.extract_strided_slice %30 {offsets = [0, 24], sizes = [16, 8], strides = [1, 1]} : vector<16x32xf32> to vector<16x8xf32>
    %93 = vector.extract_strided_slice %32 {offsets = [0, 24], sizes = [16, 8], strides = [1, 1]} : vector<16x32xf32> to vector<16x8xf32>
    %94 = vector.extract_strided_slice %37 {offsets = [0, 24], sizes = [16, 8], strides = [1, 1]} : vector<16x32xf32> to vector<16x8xf32>
    %cst_39 = arith.constant dense<0.000000e+00> : vector<16x16xf32>
    %95 = tpu.matmul %92, %93, %cst_39 {dimension_numbers = #tpu.dot_dimension_numbers<[1], [1], [0], [0], [0, 0, 1, 0], [], []>} : vector<16x8xf32>, vector<16x8xf32>, vector<16x16xf32> -> vector<16x16xf32>
    %cst_40 = arith.constant 0.353553385 : f32
    %96 = vector.broadcast %cst_40 : f32 to vector<16x16xf32>
    %97 = arith.mulf %95, %96 : vector<16x16xf32>
    %98 = arith.addf %97, %1 : vector<16x16xf32>
    %cst_41 = arith.constant dense<0xFF800000> : vector<16xf32>
    %99 = vector.multi_reduction <maximumf>, %98, %cst_41 [1] : vector<16x16xf32> to vector<16xf32>
    %100 = vector.shape_cast %99 : vector<16xf32> to vector<16x1xf32>
    %101 = vector.broadcast %100 : vector<16x1xf32> to vector<16x16xf32>
    %102 = arith.subf %98, %101 : vector<16x16xf32>
    %103 = math.exp %102 : vector<16x16xf32>
    %cst_42 = arith.constant dense<0.000000e+00> : vector<16xf32>
    %104 = vector.multi_reduction <add>, %103, %cst_42 [1] : vector<16x16xf32> to vector<16xf32>
    %105 = vector.shape_cast %104 : vector<16xf32> to vector<16x1xf32>
    %106 = tpu.reciprocal %105 {approx = true} : vector<16x1xf32> -> vector<16x1xf32>
    %107 = vector.broadcast %106 : vector<16x1xf32> to vector<16x16xf32>
    %108 = arith.mulf %103, %107 : vector<16x16xf32>
    %cst_43 = arith.constant dense<0.000000e+00> : vector<16x8xf32>
    %109 = tpu.matmul %108, %94, %cst_43 {dimension_numbers = #tpu.dot_dimension_numbers<[1], [0], [0], [1], [0, 0, 1, 1], [], []>} : vector<16x16xf32>, vector<16x8xf32>, vector<16x8xf32> -> vector<16x8xf32>
    %110 = tpu.concatenate %55, %73, %91, %109 in 1 : vector<16x8xf32>, vector<16x8xf32>, vector<16x8xf32>, vector<16x8xf32> -> vector<16x32xf32>
    %c0_44 = arith.constant 0 : index
    %c0_45 = arith.constant 0 : index
    %111 = vector.load %arg9[%c0_44, %c0_45] : memref<32x32xf32, #tpu.memory_space<vmem>>, vector<32x32xf32>
    %cst_46 = arith.constant dense<0.000000e+00> : vector<16x32xf32>
    %112 = tpu.matmul %110, %111, %cst_46 {dimension_numbers = #tpu.dot_dimension_numbers<[1], [0], [0], [1], [0, 0, 1, 1], [], []>} : vector<16x32xf32>, vector<32x32xf32>, vector<16x32xf32> -> vector<16x32xf32>
    %c0_47 = arith.constant 0 : index
    %c0_48 = arith.constant 0 : index
    %113 = vector.load %arg10[%c0_47, %c0_48] : memref<1x32xf32, #tpu.memory_space<vmem>>, vector<1x32xf32>
    %114 = vector.broadcast %113 : vector<1x32xf32> to vector<16x32xf32>
    %115 = arith.addf %112, %114 : vector<16x32xf32>
    %116 = arith.addf %0, %115 : vector<16x32xf32>
    %c0_49 = arith.constant 0 : index
    %c0_50 = arith.constant 0 : index
    %117 = vector.load %arg11[%c0_49, %c0_50] : memref<1x32xf32, #tpu.memory_space<vmem>>, vector<1x32xf32>
    %c0_51 = arith.constant 0 : index
    %c0_52 = arith.constant 0 : index
    %118 = vector.load %arg12[%c0_51, %c0_52] : memref<1x32xf32, #tpu.memory_space<vmem>>, vector<1x32xf32>
    %cst_53 = arith.constant dense<0.000000e+00> : vector<16xf32>
    %119 = vector.multi_reduction <add>, %116, %cst_53 [1] : vector<16x32xf32> to vector<16xf32>
    %120 = vector.shape_cast %119 : vector<16xf32> to vector<16x1xf32>
    %cst_54 = arith.constant 3.200000e+01 : f32
    %121 = vector.broadcast %cst_54 : f32 to vector<16x1xf32>
    %122 = arith.divf %120, %121 : vector<16x1xf32>
    %123 = vector.broadcast %122 : vector<16x1xf32> to vector<16x32xf32>
    %124 = arith.subf %116, %123 : vector<16x32xf32>
    %125 = arith.mulf %124, %124 : vector<16x32xf32>
    %cst_55 = arith.constant dense<0.000000e+00> : vector<16xf32>
    %126 = vector.multi_reduction <add>, %125, %cst_55 [1] : vector<16x32xf32> to vector<16xf32>
    %127 = vector.shape_cast %126 : vector<16xf32> to vector<16x1xf32>
    %cst_56 = arith.constant 3.200000e+01 : f32
    %128 = vector.broadcast %cst_56 : f32 to vector<16x1xf32>
    %129 = arith.divf %127, %128 : vector<16x1xf32>
    %130 = vector.broadcast %122 : vector<16x1xf32> to vector<16x32xf32>
    %131 = arith.subf %116, %130 : vector<16x32xf32>
    %cst_57 = arith.constant 9.99999974E-6 : f32
    %132 = vector.broadcast %cst_57 : f32 to vector<16x1xf32>
    %133 = arith.addf %129, %132 : vector<16x1xf32>
    %134 = math.rsqrt %133 : vector<16x1xf32>
    %135 = vector.broadcast %134 : vector<16x1xf32> to vector<16x32xf32>
    %136 = arith.mulf %131, %135 : vector<16x32xf32>
    %137 = vector.broadcast %117 : vector<1x32xf32> to vector<16x32xf32>
    %138 = arith.mulf %136, %137 : vector<16x32xf32>
    %139 = vector.broadcast %118 : vector<1x32xf32> to vector<16x32xf32>
    %140 = arith.addf %138, %139 : vector<16x32xf32>
    %c0_58 = arith.constant 0 : index
    %c0_59 = arith.constant 0 : index
    %141 = vector.load %arg13[%c0_58, %c0_59] : memref<32x64xf32, #tpu.memory_space<vmem>>, vector<32x64xf32>
    %cst_60 = arith.constant dense<0.000000e+00> : vector<16x64xf32>
    %142 = tpu.matmul %140, %141, %cst_60 {dimension_numbers = #tpu.dot_dimension_numbers<[1], [0], [0], [1], [0, 0, 1, 1], [], []>} : vector<16x32xf32>, vector<32x64xf32>, vector<16x64xf32> -> vector<16x64xf32>
    %c0_61 = arith.constant 0 : index
    %c0_62 = arith.constant 0 : index
    %143 = vector.load %arg14[%c0_61, %c0_62] : memref<1x64xf32, #tpu.memory_space<vmem>>, vector<1x64xf32>
    %144 = vector.broadcast %143 : vector<1x64xf32> to vector<16x64xf32>
    %145 = arith.addf %142, %144 : vector<16x64xf32>
    %cst_63 = arith.constant 5.000000e-01 : f32
    %146 = vector.broadcast %cst_63 : f32 to vector<16x64xf32>
    %147 = arith.mulf %146, %145 : vector<16x64xf32>
    %cst_64 = arith.constant 0.707106769 : f32
    %148 = vector.broadcast %cst_64 : f32 to vector<16x64xf32>
    %149 = arith.mulf %145, %148 : vector<16x64xf32>
    %150 = math.absf %149 : vector<16x64xf32>
    %cst_65 = arith.constant 0.327591091 : f32
    %151 = vector.broadcast %cst_65 : f32 to vector<16x64xf32>
    %152 = arith.mulf %151, %150 : vector<16x64xf32>
    %cst_66 = arith.constant 1.000000e+00 : f32
    %153 = vector.broadcast %cst_66 : f32 to vector<16x64xf32>
    %154 = arith.addf %153, %152 : vector<16x64xf32>
    %cst_67 = arith.constant 1.000000e+00 : f32
    %155 = vector.broadcast %cst_67 : f32 to vector<16x64xf32>
    %156 = arith.divf %155, %154 : vector<16x64xf32>
    %cst_68 = arith.constant 1.06140542 : f32
    %157 = vector.broadcast %cst_68 : f32 to vector<16x64xf32>
    %158 = arith.mulf %157, %156 : vector<16x64xf32>
    %cst_69 = arith.constant -1.45315206 : f32
    %159 = vector.broadcast %cst_69 : f32 to vector<16x64xf32>
    %160 = arith.addf %158, %159 : vector<16x64xf32>
    %161 = arith.mulf %160, %156 : vector<16x64xf32>
    %cst_70 = arith.constant 1.42141378 : f32
    %162 = vector.broadcast %cst_70 : f32 to vector<16x64xf32>
    %163 = arith.addf %161, %162 : vector<16x64xf32>
    %164 = arith.mulf %163, %156 : vector<16x64xf32>
    %cst_71 = arith.constant -0.284496725 : f32
    %165 = vector.broadcast %cst_71 : f32 to vector<16x64xf32>
    %166 = arith.addf %164, %165 : vector<16x64xf32>
    %167 = arith.mulf %166, %156 : vector<16x64xf32>
    %cst_72 = arith.constant 0.254829586 : f32
    %168 = vector.broadcast %cst_72 : f32 to vector<16x64xf32>
    %169 = arith.addf %167, %168 : vector<16x64xf32>
    %170 = arith.mulf %169, %156 : vector<16x64xf32>
    %cst_73 = arith.constant 0.000000e+00 : f32
    %171 = vector.broadcast %cst_73 : f32 to vector<16x64xf32>
    %172 = arith.subf %171, %150 : vector<16x64xf32>
    %173 = arith.mulf %172, %150 : vector<16x64xf32>
    %174 = math.exp %173 : vector<16x64xf32>
    %175 = arith.mulf %170, %174 : vector<16x64xf32>
    %cst_74 = arith.constant 1.000000e+00 : f32
    %176 = vector.broadcast %cst_74 : f32 to vector<16x64xf32>
    %177 = arith.subf %176, %175 : vector<16x64xf32>
    %cst_75 = arith.constant 0.000000e+00 : f32
    %178 = vector.broadcast %cst_75 : f32 to vector<16x64xf32>
    %179 = arith.cmpf oge, %149, %178 : vector<16x64xf32>
    %cst_76 = arith.constant 0.000000e+00 : f32
    %180 = vector.broadcast %cst_76 : f32 to vector<16x64xf32>
    %181 = arith.subf %180, %177 : vector<16x64xf32>
    %182 = arith.select %179, %177, %181 : vector<16x64xi1>, vector<16x64xf32>
    %cst_77 = arith.constant 1.000000e+00 : f32
    %183 = vector.broadcast %cst_77 : f32 to vector<16x64xf32>
    %184 = arith.addf %183, %182 : vector<16x64xf32>
    %185 = arith.mulf %147, %184 : vector<16x64xf32>
    %c0_78 = arith.constant 0 : index
    %c0_79 = arith.constant 0 : index
    %186 = vector.load %arg15[%c0_78, %c0_79] : memref<64x32xf32, #tpu.memory_space<vmem>>, vector<64x32xf32>
    %cst_80 = arith.constant dense<0.000000e+00> : vector<16x32xf32>
    %187 = tpu.matmul %185, %186, %cst_80 {dimension_numbers = #tpu.dot_dimension_numbers<[1], [0], [0], [1], [0, 0, 1, 1], [], []>} : vector<16x64xf32>, vector<64x32xf32>, vector<16x32xf32> -> vector<16x32xf32>
    %c0_81 = arith.constant 0 : index
    %c0_82 = arith.constant 0 : index
    %188 = vector.load %arg16[%c0_81, %c0_82] : memref<1x32xf32, #tpu.memory_space<vmem>>, vector<1x32xf32>
    %189 = vector.broadcast %188 : vector<1x32xf32> to vector<16x32xf32>
    %190 = arith.addf %187, %189 : vector<16x32xf32>
    %191 = arith.addf %116, %190 : vector<16x32xf32>
    %c0_83 = arith.constant 0 : index
    %c0_84 = arith.constant 0 : index
    %192 = vector.load %arg17[%c0_83, %c0_84] : memref<16x32xf32, #tpu.memory_space<vmem>>, vector<16x32xf32>
    tpu.vector_store %arg17[%c0_83, %c0_84], %191 {strides = array<i32>} : memref<16x32xf32, #tpu.memory_space<vmem>>, vector<16x32xf32>,
    return
  }
}

</mosaic_0001>

<bundles_post_ra>
// kernel: tpu_custom_call.1
= control target key start
LH: loop header
LB: loop body
LE: loop exit
PB: predicated region body
PF: predicated region fallthrough
CT: control target
= control target key end

     0   :  { %s1645_s0 = inlined_call_operand.hbm [shape: f32[16,32], index: 0, kind: input, shape index: {}]   ;;  %s1646_s1 = inlined_call_operand.hbm [shape: f32[16,16], index: 1, kind: input, shape index: {}]   ;;  %s1647_s2 = inlined_call_operand.vmem [shape: f32[1,32], index: 2, kind: input, shape index: {}]   ;;  %s1648_s3 = inlined_call_operand.hbm [shape: f32[1,32], index: 3, kind: input, shape index: {}]   ;;  %s1649_s4 = inlined_call_operand.vmem [shape: f32[32,32], index: 4, kind: input, shape index: {}]   ;;  %s1650_s5 = inlined_call_operand.vmem [shape: f32[1,32], index: 5, kind: input, shape index: {}]   ;;  %s1651_s6 = inlined_call_operand.vmem [shape: f32[32,32], index: 6, kind: input, shape index: {}]   ;;  %s1652_s7 = inlined_call_operand.vmem [shape: f32[32,32], index: 7, kind: input, shape index: {}]   ;;  %s1653_s8 = inlined_call_operand.vmem [shape: f32[1,32], index: 8, kind: input, shape index: {}]   ;;  %s1654_s9 = inlined_call_operand.hbm [shape: f32[32,32], index: 9, kind: input, shape index: {}]   ;;  %s1655_s10 = inlined_call_operand.vmem [shape: f32[1,32], index: 10, kind: input, shape index: {}]   ;;  %s1656_s11 = inlined_call_operand.vmem [shape: f32[1,32], index: 11, kind: input, shape index: {}]   ;;  %s1657_s12 = inlined_call_operand.vmem [shape: f32[1,32], index: 12, kind: input, shape index: {}]   ;;  %s1658_s13 = inlined_call_operand.hbm [shape: f32[32,64], index: 13, kind: input, shape index: {}]   ;;  %s1659_s14 = inlined_call_operand.vmem [shape: f32[1,64], index: 14, kind: input, shape index: {}]   ;;  %s1660_s15 = inlined_call_operand.vmem [shape: f32[64,32], index: 15, kind: input, shape index: {}]   ;;  %s1661_s16 = inlined_call_operand.vmem [shape: f32[1,32], index: 16, kind: input, shape index: {}]   ;;  %s1662_s17 = inlined_call_operand.hbm [shape: f32[16,32], index: 17, kind: output, shape index: {}]  }
   0x1   :  { %1663 = sst [smem:[#allocation16_spill]] %s1645_s0 }
   0x2   :  { %1664 = sst [smem:[#allocation17_spill]] %s1646_s1 }
   0x3   :  { %22 = vsyncpa [#allocation3], 0 }
   0x4   :  { %23 = vsyncpa [#allocation6], 0 }
   0x5   :  { %24 = vsyncpa [#allocation9], 0 }
   0x6   :  { %25 = vsyncpa [#allocation4], 0  ;;  %s1665_s26 = sld [smem:[#allocation17_spill]]  ;;  %s1284_s28 = smov [#allocation5]  }
   0x7   :  { %s45_s29 = sshll.u32 %s1284_s28, 4  ;;  %s79_s18 = sshll.u32 %s1654_s9, 4  ;;  %s46_s29 = int_to_ptr.vmem [resolvable:$true] %s45_s29  ;;  %s80_s18 = int_to_ptr.hbm [resolvable:$true] %s79_s18 }
   0x8   :  { %s1285_s19 = smov 128   ;;  %s1286_s1 = smov 8  }
   0x9   :  { %s1287_s20 = smov [#allocation8]   ;;  %s1666_s24 = sld [smem:[#allocation16_spill]] }
   0xa   :  { %s81_s21 = sshll.u32 %s1287_s20, 4  ;;  %s59_s28 = sshll.u32 %s1648_s3, 4  ;;  %s82_s21 = int_to_ptr.vmem [resolvable:$true] %s81_s21  ;;  %s60_s28 = int_to_ptr.hbm [resolvable:$true] %s59_s28 }
   0xb   :  { %87 = dma.hbm_to_vmem [thread:$0]  %s80_s18, 512, %s82_s21, [#allocation9], %s1285_s19, %s1285_s19, %s1286_s1  }
   0xc   :  { %s43_s27 = sshll.u32 %s1665_s26, 4  ;;  %s1288_s0 = smov [#allocation2]   ;;  %s44_s27 = int_to_ptr.hbm [resolvable:$true] %s43_s27 }
   0xd   :  { %51 = dma.hbm_to_vmem [thread:$0]  %s44_s27, 256, %s46_s29, [#allocation6], %s1285_s19, %s1285_s19, %s1286_s1  }
   0xe   :  { %s32_s30 = sshll.u32 %s1288_s0, 4  ;;  %s1289_s27 = smov [#allocation7]   ;;  %s33_s30 = int_to_ptr.vmem [resolvable:$true] %s32_s30 }
   0xf   :  { %s30_s25 = sshll.u32 %s1666_s24, 4  ;;  %s61_s29 = sshll.u32 %s1289_s27, 4  ;;  %s31_s25 = int_to_ptr.hbm [resolvable:$true] %s30_s25  ;;  %s62_s29 = int_to_ptr.vmem [resolvable:$true] %s61_s29 }
  0x10   :  { %38 = dma.hbm_to_vmem [thread:$0]  %s31_s25, 256, %s33_s30, [#allocation3], %s1285_s19, %s1285_s19, %s1286_s1  }
  0x11   :  { %s98_s23 = sshll.u32 %s1658_s13, 4  ;;  %s1290_s18 = smov [#allocation10]   ;;  %s99_s23 = int_to_ptr.hbm [resolvable:$true] %s98_s23 }
  0x12   :  { %64 = dma.hbm_to_vmem [thread:$0]  %s60_s28, 16, %s62_s29, [#allocation6]  }
  0x13   :  { %s100_s21 = sshll.u32 %s1290_s18, 4  ;;  %s101_s21 = int_to_ptr.vmem [resolvable:$true] %s100_s21 }
  0x14   :  { %106 = dma.hbm_to_vmem [thread:$0]  %s99_s23, 512, %s101_s21, [#allocation9], %s1285_s19, %s1285_s19, %s1286_s1  }
  0x15   :  { %1276 = dma.done.wait [#allocation3], 256  }
  0x16   :  { %1277 = vsyncadd [#allocation3], 4294967040 }
  0x17   :  { %1278 = dma.done.wait [#allocation6], 272  }
  0x18   :  { %1279 = vsyncadd [#allocation6], 4294967024 }
  0x19   :  { %1280 = dma.done.wait [#allocation9], 1024  }
  0x1a   :  { %1281 = vsyncadd [#allocation9], 4294966272  ;;  %vm139_vm0 = vcmask 261120   ;;  %v1415_v0 = vld [vmem:[#allocation2 + $0x8] sm:$0xff]  ;;  %v1419_v2 = vld [vmem:[#allocation2] sm:$0xff]  ;;  %v1291_v4 = vmov 32.0  }
  0x1b   :  { %v143_v1 = vsel %vm139_vm0, %v1415_v0, 0.0  ;;  %v140_v3 = vsel %vm139_vm0, %v1419_v2, 0.0  ;;  %1082 = vrcp.f32 %v1291_v4  ;;  %v204_v21 = vld [vmem:[%s1649_s4 + $0x18] sm:$0xff]  ;;  %v203_v23 = vld [vmem:[%s1649_s4 + $0x10] sm:$0xff]  ;;  %v202_v25 = vld [vmem:[%s1649_s4 + $0x8] sm:$0xff]  ;;  %vm296_vm8 = vcmask 64512  }
  0x1c   :  { %144 = vadd.xlane.f32.xlu0 %v143_v1  ;;  %v241_v22 = vld [vmem:[%s1651_s6 + $0x18] sm:$0xff]  ;;  %1036 = vmatpush.msra.mxu2 %v204_v21  ;;  %v240_v24 = vld [vmem:[%s1651_s6 + $0x10] sm:$0xff]  ;;  %v239_v26 = vld [vmem:[%s1651_s6 + $0x8] sm:$0xff]  ;;  %s1292_s30 = smov 120   ;;  %s1294_s27 = smov 104   ;;  %vm336_vm9 = vcmask 130048  }
  0x1d   :  { %1040 = vmatpush.msra.mxu3 %v241_v22  ;;  %227 = vmatpush.msra.mxu0 %v204_v21  ;;  %v201_v27 = vld [vmem:[%s1649_s4] sm:$0xff]  ;;  %v268_v29 = vld [vmem:[%s1652_s7 + $0x18] sm:$0xff]  ;;  %v267_v30 = vld [vmem:[%s1652_s7 + $0x10] sm:$0xff]  ;;  %s1296_s22 = smov 24   ;;  %vm718_vm10 = vcmask 195584   ;;  %s985_s21 = sshll.u32 %s1662_s17, 4  ;;  %s986_s21 = int_to_ptr.hbm [resolvable:$true] %s985_s21 }
  0x1e   :  { %254 = vmatpush.msra.mxu1 %v241_v22  ;;  %1037 = vmatpush.msra.mxu2 %v203_v23  ;;  %v238_v28 = vld [vmem:[%s1651_s6] sm:$0xff]  ;;  %v266_v31 = vld [vmem:[%s1652_s7 + $0x8] sm:$0xff] }
  0x1f   :  { %1041 = vmatpush.msra.mxu3 %v240_v24  ;;  %228 = vmatpush.msra.mxu0 %v203_v23  ;;  %v265_v34 = vld [vmem:[%s1652_s7] sm:$0xff] }
  0x20   :  { %255 = vmatpush.msra.mxu1 %v240_v24  ;;  %1038 = vmatpush.msra.mxu2 %v202_v25  ;;  %v1073_v47 = vld [vmem:[%s1647_s2] ss:$0 sm:$0xff]  ;;  %v135_v24 = vld [vmem:[#allocation5] sm:$0xff] }
  0x21   :  { %v1083_v5 = vpop.eup %1082  ;;  %1042 = vmatpush.msra.mxu3 %v239_v26  ;;  %229 = vmatpush.msra.mxu0 %v202_v25  ;;  %v1074_v51 = vld [vmem:[#allocation7] ss:$0 sm:$0xff] }
  0x22   :  { %v147_v6 = vmul.f32 32.0, %v1083_v5  ;;  %vm151_vm1 = vweird.f32 %v1083_v5  ;;  %256 = vmatpush.msra.mxu1 %v239_v26  ;;  %1039 = vmatpush.msra.mxu2 %v201_v27  ;;  %v1075_v61 = vld [vmem:[%s1650_s5] ss:$0 sm:$0xff]  ;;  %s1293_s5 = smov 112  }
  0x23   :  { %1043 = vmatpush.msra.mxu3 %v238_v28  ;;  %230 = vmatpush.msra.mxu0 %v201_v27 }
  0x24   :  { %141 = vadd.xlane.f32.xlu0 %v140_v3  ;;  %v148_v7 = vsub.f32 1.0, %v147_v6  ;;  %257 = vmatpush.msra.mxu1 %v238_v28 }
  0x25   :  { %285 = vmatpush.msrb.mxu2 %v268_v29 }
  0x26   :  { %v149_v8 = vmul.f32 %v1083_v5, %v148_v7  ;;  %v1076_v7 = vld [vmem:[%s1653_s8] ss:$0 sm:$0xff]  ;;  %s1295_s8 = smov 16  }
  0x27   :  { %286 = vmatpush.msrb.mxu2 %v267_v30 }
  0x28   :  { %v150_v9 = vadd.f32 %v1083_v5, %v149_v8 }
  0x29   :  { %287 = vmatpush.msrb.mxu2 %v266_v31 }
  0x2a   :  { %v1423_v10 = vsel %vm151_vm1, %v1083_v5, %v150_v9 }
  0x2b   :  { %288 = vmatpush.msrb.mxu2 %v265_v34 }
  0x8f   :  { %v145_v11 = vpop.xlane.xlu0 %144 }
  0x90   :  { %v154_v12 = vmul.f32 %v1423_v10, %v145_v11 }
  0x92   :  { %v1427_v13 = vsub.f32 %v1415_v0, %v154_v12 }
  0x94   :  { %v158_v14 = vmul.f32 %v1427_v13, %v1427_v13 }
  0x96   :  { %v162_v15 = vsel %vm139_vm0, %v158_v14, 0.0 }
  0x97   :  { %163 = vadd.xlane.f32.xlu1 %v162_v15  ;;  %v142_v16 = vpop.xlane.xlu0 %141 }
  0x98   :  { %v153_v17 = vmul.f32 %v1423_v10, %v142_v16 }
  0x9a   :  { %v1434_v18 = vsub.f32 %v1419_v2, %v153_v17 }
  0x9c   :  { %v157_v19 = vmul.f32 %v1434_v18, %v1434_v18 }
  0x9e   :  { %v159_v20 = vsel %vm139_vm0, %v157_v19, 0.0 }
  0x9f   :  { %160 = vadd.xlane.f32.xlu1 %v159_v20 }
 0x10a   :  { %v164_v32 = vpop.xlane.xlu1 %163 }
 0x10b   :  { %v166_v33 = vmul.f32 %v164_v32, %v1423_v10 }
 0x10d   :  { %v168_v35 = vadd.f32 1e-05, %v166_v33 }
 0x10f   :  { %1084 = vrsqrt.f32 %v168_v35  ;;  %vm185_vm3 = vweird.f32 %v168_v35 }
 0x112   :  { %v161_v36 = vpop.xlane.xlu1 %160 }
 0x113   :  { %v165_v37 = vmul.f32 %v161_v36, %v1423_v10  ;;  %v136_v36 = vld [vmem:[#allocation5 + $0x8] sm:$0xff] }
 0x115   :  { %v1085_v38 = vpop.eup %1084  ;;  %v167_v39 = vadd.f32 1e-05, %v165_v37 }
 0x116   :  { %v180_v40 = vmul.f32 %v1085_v38, %v168_v35  ;;  %vm186_vm2 = vweird.f32 %v1085_v38 }
 0x117   :  { %1086 = vrsqrt.f32 %v167_v39  ;;  %vm187_vm4 = vmor %vm185_vm3, %vm186_vm2  ;;  %vm175_vm6 = vweird.f32 %v167_v39 }
 0x118   :  { %v181_v41 = vmul.f32 %v1085_v38, %v180_v40 }
 0x11a   :  { %v182_v42 = vmul.f32 0.5, %v181_v41 }
 0x11c   :  { %v183_v43 = vsub.f32 1.5, %v182_v42 }
 0x11d   :  { %v1087_v44 = vpop.eup %1086 }
 0x11e   :  { %v184_v45 = vmul.f32 %v1085_v38, %v183_v43  ;;  %v170_v46 = vmul.f32 %v1087_v44, %v167_v39  ;;  %vm176_vm5 = vweird.f32 %v1087_v44 }
 0x11f   :  { %vm177_vm7 = vmor %vm175_vm6, %vm176_vm5 }
 0x120   :  { %v188_v48 = vsel %vm187_vm4, %v1085_v38, %v184_v45  ;;  %v171_v49 = vmul.f32 %v1087_v44, %v170_v46 }
 0x121   :  { %v190_v50 = vmul.f32 %v188_v48, %v1427_v13 }
 0x122   :  { %v172_v52 = vmul.f32 0.5, %v171_v49 }
 0x123   :  { %v195_v53 = vmul.f32 %v1073_v47, %v190_v50 }
 0x124   :  { %v173_v54 = vsub.f32 1.5, %v172_v52 }
 0x125   :  { %v200_v55 = vadd.f32 %v1074_v51, %v195_v53 }
 0x126   :  { %v174_v56 = vmul.f32 %v1087_v44, %v173_v54 }
 0x127   :  { %1001 = vmatmul.msk.f32.vlgmr.msra.gmra.mxu2 %vm139_vm0, %v200_v55  ;;  %1003 = vmatmul.msk.f32.vlgmr.msra.gmra.mxu3 %vm139_vm0, %v200_v55 }
 0x128   :  { %v178_v57 = vsel %vm177_vm7, %v1087_v44, %v174_v56  ;;  %vm945_vm7 = vcmask 523264  }
 0x129   :  { %v189_v58 = vmul.f32 %v178_v57, %v1434_v18 }
 0x12b   :  { %v194_v59 = vmul.f32 %v1073_v47, %v189_v58 }
 0x12d   :  { %v199_v60 = vadd.f32 %v1074_v51, %v194_v59 }
 0x12f   :  { %1000 = vmatmul.msk.f32.vlgmr.msra.gmra.mxu0 %vm139_vm0, %v199_v60  ;;  %1002 = vmatmul.msk.f32.vlgmr.msra.gmra.mxu1 %vm139_vm0, %v199_v60 }
 0x130   :  { %1004 = vmatmul.msk.f32.vlgmr.msrb.gmra.mxu2 %vm139_vm0, %v199_v60 }
 0x138   :  { %1005 = vmatmul.msk.f32.gmra.mxu2 %vm139_vm0, %v200_v55 }
 0x1aa   :  { %v235_v62 = vpop.f32.mrf.mxu2  ;;  %v262_v63 = vpop.f32.mrf.mxu3 }
 0x1ab   :  { %v236_v1 = vadd.f32 %v1075_v61, %v235_v62  ;;  %1006 = vmatpush.xpose.msk.msrb.mxu3 %vm296_vm8, %v262_v63 }
 0x1ac   :  { %v232_v3 = vpop.f32.mrf.mxu0  ;;  %v259_v4 = vpop.f32.mrf.mxu1 }
 0x1ad   :  { %v233_v5 = vadd.f32 %v1075_v61, %v232_v3  ;;  %390 = vrot.lane.b32.xlu1 %v236_v1, %s1292_s30  ;;  %392 = vrot.lane.b32.xlu2 %v259_v4, %s1292_s30 }
 0x1af   :  { %1007 = vmatpush.xpose.msk.msrb.mxu3 %vm296_vm8, %v259_v4  ;;  %388 = vrot.lane.b32.xlu0 %v233_v5, %s1292_s30 }
 0x1b2   :  { %1008 = vmatmul.msk.f32.vlgmr.msrb.gmra.mxu3 %vm296_vm8, %v233_v5 }
 0x1b3   :  { %v290_v6 = vpop.f32.mrf.mxu2 }
 0x1b4   :  { %v291_v9 = vadd.f32 %v1076_v7, %v290_v6 }
 0x1b5   :  { %494 = vrot.lane.b32.xlu2 %v259_v4, %s1293_s5  ;;  %590 = vrot.lane.b32.xlu1 %v233_v5, %s1294_s27 }
 0x1b7   :  { %594 = vrot.lane.b32.xlu0 %v259_v4, %s1294_s27 }
 0x1ba   :  { %1009 = vmatmul.msk.f32.gmra.mxu3 %vm296_vm8, %v236_v1 }
 0x1bb   :  { %v293_v8 = vpop.f32.mrf.mxu2 }
 0x1bc   :  { %v294_v11 = vadd.f32 %v1076_v7, %v293_v8 }
 0x1bd   :  { %394 = vrot.lane.b32.xlu2 %v262_v63, %s1292_s30 }
 0x1be   :  { %379 = vmatpush.msrb.mxu0 %v294_v11  ;;  %v1505_v12 = vpack.i.bf16 %v291_v9, %v294_v11 }
 0x1bf   :  { %492 = vrot.lane.b32.xlu0 %v236_v1, %s1293_s5 }
 0x1c0   :  { %380 = vmatpush.msrb.mxu0 %v291_v9 }
 0x1c5   :  { %496 = vrot.lane.b32.xlu2 %v262_v63, %s1293_s5 }
 0x1cd   :  { %596 = vrot.lane.b32.xlu2 %v262_v63, %s1294_s27 }
 0x1d5   :  { %490 = vrot.lane.b32.xlu2 %v233_v5, %s1293_s5 }
 0x1dd   :  { %592 = vrot.lane.b32.xlu2 %v236_v1, %s1294_s27 }
 0x207   :  { %v393_v13 = vpop.permute.xlu2 %392 }
 0x20f   :  { %v495_v14 = vpop.permute.xlu2 %494 }
 0x217   :  { %v395_v15 = vpop.permute.xlu2 %394 }
 0x218   :  { %1012 = vmatpush.xpose.msk.msrb.mxu1 %vm296_vm8, %v395_v15 }
 0x21c   :  { %1013 = vmatpush.xpose.msk.msrb.mxu1 %vm296_vm8, %v393_v13 }
 0x21f   :  { %v497_v16 = vpop.permute.xlu2 %496  ;;  %v391_v18 = vpop.permute.xlu1 %390 }
 0x220   :  { %1018 = vmatpush.xpose.msk.msra.mxu3 %vm296_vm8, %v497_v16 }
 0x221   :  { %v389_v17 = vpop.permute.xlu0 %388 }
 0x222   :  { %1014 = vmatmul.msk.f32.vlgmr.msrb.gmra.mxu1 %vm296_vm8, %v389_v17 }
 0x224   :  { %1019 = vmatpush.xpose.msk.msra.mxu3 %vm296_vm8, %v495_v14 }
 0x227   :  { %v597_v19 = vpop.permute.xlu2 %596  ;;  %v591_v22 = vpop.permute.xlu1 %590 }
 0x228   :  { %1024 = vmatpush.xpose.msk.msra.mxu1 %vm296_vm8, %v597_v19 }
 0x229   :  { %v595_v20 = vpop.permute.xlu0 %594 }
 0x22a   :  { %1015 = vmatmul.msk.f32.gmra.mxu1 %vm296_vm8, %v391_v18 }
 0x22c   :  { %1025 = vmatpush.xpose.msk.msra.mxu1 %vm296_vm8, %v595_v20 }
 0x22f   :  { %v491_v21 = vpop.permute.xlu2 %490 }
 0x230   :  { %1020 = vmatmul.msk.f32.vlgmr.msra.gmra.mxu3 %vm296_vm8, %v491_v21 }
 0x231   :  { %v493_v26 = vpop.permute.xlu0 %492 }
 0x232   :  { %1026 = vmatmul.msk.f32.vlgmr.msra.gmra.mxu1 %vm296_vm8, %v591_v22 }
 0x235   :  { %v326_v23 = vpop.f32.mrf.mxu3 }
 0x236   :  { %v332_v25 = vmul.f32 0.35355338, %v326_v23 }
 0x237   :  { %v593_v28 = vpop.permute.xlu2 %592 }
 0x238   :  { %1021 = vmatmul.msk.f32.gmra.mxu3 %vm296_vm8, %v493_v26  ;;  %v334_v27 = vadd.f32 %v332_v25, %v135_v24 }
 0x23a   :  { %1027 = vmatmul.msk.f32.gmra.mxu1 %vm296_vm8, %v593_v28  ;;  %v337_v29 = vsel %vm336_vm9, %v334_v27, -inf }
 0x23b   :  { %338 = vmax.xlane.f32.xlu0 %v337_v29 }
 0x23d   :  { %v329_v32 = vpop.f32.mrf.mxu3 }
 0x23e   :  { %v333_v34 = vmul.f32 0.35355338, %v329_v32 }
 0x240   :  { %v335_v38 = vadd.f32 %v333_v34, %v136_v36 }
 0x242   :  { %v340_v39 = vsel %vm336_vm9, %v335_v38, -inf }
 0x29f   :  { %v421_v30 = vpop.f32.mrf.mxu1 }
 0x2a0   :  { %v427_v31 = vmul.f32 0.35355338, %v421_v30 }
 0x2a2   :  { %v429_v33 = vadd.f32 %v427_v31, %v135_v24 }
 0x2a4   :  { %v431_v35 = vsel %vm336_vm9, %v429_v33, -inf }
 0x2a5   :  { %432 = vmax.xlane.f32.xlu1 %v431_v35 }
 0x2a7   :  { %v424_v37 = vpop.f32.mrf.mxu1 }
 0x2a8   :  { %v428_v48 = vmul.f32 0.35355338, %v424_v37 }
 0x2aa   :  { %v430_v55 = vadd.f32 %v428_v48, %v136_v36 }
 0x2ac   :  { %v434_v60 = vsel %vm336_vm9, %v430_v55, -inf }
 0x2ad   :  { %341 = vmax.xlane.f32.xlu1 %v340_v39 }
 0x2ae   :  { %v339_v40 = vpop.xlane.xlu0 %338 }
 0x2af   :  { %v343_v41 = vsub.f32 %v334_v27, %v339_v40  ;;  %v623_v42 = vpop.f32.mrf.mxu1 }
 0x2b0   :  { %v629_v58 = vmul.f32 0.35355338, %v623_v42 }
 0x2b1   :  { %v345_v43 = vmul.f32 1.442695, %v343_v41 }
 0x2b2   :  { %v631_v62 = vadd.f32 %v629_v58, %v135_v24 }
 0x2b3   :  { %1088 = vpow2.f32 %v345_v43  ;;  %v523_v44 = vpop.f32.mrf.mxu3 }
 0x2b4   :  { %v529_v45 = vmul.f32 0.35355338, %v523_v44  ;;  %v633_v63 = vsel %vm336_vm9, %v631_v62, -inf }
 0x2b6   :  { %v531_v46 = vadd.f32 %v529_v45, %v135_v24 }
 0x2b7   :  { %v626_v47 = vpop.f32.mrf.mxu1 }
 0x2b8   :  { %v533_v49 = vsel %vm336_vm9, %v531_v46, -inf  ;;  %v630_v51 = vmul.f32 0.35355338, %v626_v47 }
 0x2b9   :  { %v1089_v50 = vpop.eup %1088  ;;  %534 = vmax.xlane.f32.xlu2 %v533_v49 }
 0x2ba   :  { %v349_v52 = vsel %vm336_vm9, %v1089_v50, 0.0  ;;  %v632_v57 = vadd.f32 %v630_v51, %v136_v36 }
 0x2bb   :  { %v526_v53 = vpop.f32.mrf.mxu3  ;;  %350 = vadd.xlane.f32.xlu1 %v349_v52 }
 0x2bc   :  { %v530_v54 = vmul.f32 0.35355338, %v526_v53  ;;  %v636_v61 = vsel %vm336_vm9, %v632_v57, -inf }
 0x2be   :  { %v1529_v56 = vadd.f32 %v530_v54, %v136_v36 }
 0x2c0   :  { %v536_v59 = vsel %vm336_vm9, %v1529_v56, -inf }
 0x2c1   :  { %537 = vmax.xlane.f32.xlu0 %v536_v59  ;;  %435 = vmax.xlane.f32.xlu2 %v434_v60 }
 0x2c3   :  { %637 = vmax.xlane.f32.xlu1 %v636_v61 }
 0x2c9   :  { %634 = vmax.xlane.f32.xlu0 %v633_v63 }
 0x2dd   :  { %1059 = vrot.lane.b32.xlu0 %v1505_v12, %s1292_s30 }
 0x318   :  { %v433_v1 = vpop.xlane.xlu1 %432 }
 0x319   :  { %v437_v3 = vsub.f32 %v429_v33, %v433_v1 }
 0x31b   :  { %v439_v4 = vmul.f32 1.442695, %v437_v3 }
 0x31d   :  { %1090 = vpow2.f32 %v439_v4 }
 0x320   :  { %v342_v5 = vpop.xlane.xlu1 %341 }
 0x321   :  { %v344_v6 = vsub.f32 %v335_v38, %v342_v5 }
 0x323   :  { %v1091_v7 = vpop.eup %1090  ;;  %v347_v8 = vmul.f32 1.442695, %v344_v6 }
 0x324   :  { %v443_v9 = vsel %vm336_vm9, %v1091_v7, 0.0 }
 0x325   :  { %1092 = vpow2.f32 %v347_v8  ;;  %444 = vadd.xlane.f32.xlu2 %v443_v9 }
 0x32b   :  { %v1093_v11 = vpop.eup %1092 }
 0x32c   :  { %v535_v13 = vpop.xlane.xlu2 %534  ;;  %v352_v14 = vsel %vm336_vm9, %v1093_v11, 0.0 }
 0x32d   :  { %v539_v15 = vsub.f32 %v531_v46, %v535_v13  ;;  %353 = vadd.xlane.f32.xlu1 %v352_v14 }
 0x32e   :  { %v351_v16 = vpop.xlane.xlu1 %350 }
 0x32f   :  { %v541_v17 = vmul.f32 1.442695, %v539_v15  ;;  %1094 = vrcp.f32 %v351_v16 }
 0x331   :  { %1096 = vpow2.f32 %v541_v17 }
 0x334   :  { %v538_v18 = vpop.xlane.xlu0 %537  ;;  %v436_v19 = vpop.xlane.xlu2 %435 }
 0x335   :  { %v1095_v20 = vpop.eup %1094  ;;  %v438_v21 = vsub.f32 %v430_v55, %v436_v19  ;;  %v540_v41 = vsub.f32 %v1529_v56, %v538_v18  ;;  %v724_v19 = vld [vmem:[#allocation8 + $0x18] sm:$0xff] }
 0x336   :  { %v638_v22 = vpop.xlane.xlu1 %637  ;;  %v357_v23 = vmul.f32 %v1095_v20, %v1089_v50  ;;  %v723_v20 = vld [vmem:[#allocation8 + $0x10] sm:$0xff]  ;;  %747 = vmatpush.msrb.mxu3 %v724_v19 }
 0x337   :  { %v1540_v24 = vpop.eup %1096  ;;  %v441_v25 = vmul.f32 1.442695, %v438_v21  ;;  %v640_v26 = vsub.f32 %v632_v57, %v638_v22  ;;  %v543_v42 = vmul.f32 1.442695, %v540_v41  ;;  %v722_v21 = vld [vmem:[#allocation8 + $0x8] sm:$0xff]  ;;  %v721_v22 = vld [vmem:[#allocation8] sm:$0xff] }
 0x338   :  { %1010 = vmatmul.msk.f32.vlgmr.msrb.gmra.mxu0 %vm336_vm9, %v357_v23  ;;  %v545_v27 = vsel %vm336_vm9, %v1540_v24, 0.0  ;;  %748 = vmatpush.msrb.mxu3 %v723_v20 }
 0x339   :  { %v643_v28 = vmul.f32 1.442695, %v640_v26  ;;  %546 = vadd.xlane.f32.xlu1 %v545_v27  ;;  %1098 = vpow2.f32 %v441_v25 }
 0x33a   :  { %749 = vmatpush.msrb.mxu3 %v722_v21 }
 0x33b   :  { %1100 = vpow2.f32 %v643_v28 }
 0x33c   :  { %v635_v29 = vpop.xlane.xlu0 %634  ;;  %750 = vmatpush.msrb.mxu3 %v721_v22 }
 0x33d   :  { %v639_v30 = vsub.f32 %v631_v62, %v635_v29 }
 0x33f   :  { %v641_v31 = vmul.f32 1.442695, %v639_v30  ;;  %v1099_v32 = vpop.eup %1098 }
 0x340   :  { %v446_v34 = vsel %vm336_vm9, %v1099_v32, 0.0 }
 0x341   :  { %v1101_v33 = vpop.eup %1100  ;;  %1102 = vpow2.f32 %v641_v31  ;;  %447 = vadd.xlane.f32.xlu2 %v446_v34 }
 0x342   :  { %v648_v35 = vsel %vm336_vm9, %v1101_v33, 0.0  ;;  %1104 = vpow2.f32 %v543_v42 }
 0x343   :  { %649 = vadd.xlane.f32.xlu0 %v648_v35  ;;  %v1077_v35 = vld [vmem:[%s1655_s10] ss:$0 sm:$0xff] }
 0x347   :  { %v1103_v36 = vpop.eup %1102 }
 0x348   :  { %v645_v37 = vsel %vm336_vm9, %v1103_v36, 0.0  ;;  %v1105_v43 = vpop.eup %1104 }
 0x349   :  { %646 = vadd.xlane.f32.xlu2 %v645_v37  ;;  %v548_v44 = vsel %vm336_vm9, %v1105_v43, 0.0 }
 0x34f   :  { %v1060_v38 = vpop.permute.xlu0 %1059 }
 0x350   :  { %v1061_v39 = vunpack.i.l.bf16 %v1060_v38  ;;  %v1062_v40 = vunpack.i.h.bf16 %v1060_v38 }
 0x352   :  { %481 = vmatpush.msra.mxu2 %v1061_v39  ;;  %1069 = vrot.lane.b32.xlu1 %v1505_v12, %s1293_s5 }
 0x354   :  { %482 = vmatpush.msra.mxu2 %v1062_v40 }
 0x361   :  { %1064 = vrot.lane.b32.xlu2 %v1505_v12, %s1294_s27 }
 0x38a   :  { %549 = vadd.xlane.f32.xlu2 %v548_v44 }
 0x398   :  { %v445_v45 = vpop.xlane.xlu2 %444 }
 0x399   :  { %1106 = vrcp.f32 %v445_v45 }
 0x39f   :  { %v1107_v46 = vpop.eup %1106 }
 0x3a0   :  { %v451_v47 = vmul.f32 %v1107_v46, %v1091_v7  ;;  %v354_v48 = vpop.xlane.xlu1 %353 }
 0x3a1   :  { %1108 = vrcp.f32 %v354_v48 }
 0x3a2   :  { %1016 = vmatmul.msk.f32.vlgmr.msra.gmra.mxu2 %vm336_vm9, %v451_v47 }
 0x3a7   :  { %v1109_v49 = vpop.eup %1108 }
 0x3a8   :  { %v358_v50 = vmul.f32 %v1109_v49, %v1093_v11 }
 0x3aa   :  { %1011 = vmatmul.msk.f32.gmra.mxu0 %vm336_vm9, %v358_v50 }
 0x3ac   :  { %v547_v52 = vpop.xlane.xlu1 %546 }
 0x3b4   :  { %v448_v12 = vpop.xlane.xlu2 %447 }
 0x3b5   :  { %1110 = vrcp.f32 %v448_v12  ;;  %v382_v11 = vpop.f32.mrf.mxu0 }
 0x3b6   :  { %1112 = vrcp.f32 %v547_v52  ;;  %v650_v57 = vpop.xlane.xlu0 %649  ;;  %v818_v52 = vld [vmem:[#allocation10 + $0x10] sm:$0xff] }
 0x3bb   :  { %v1111_v51 = vpop.eup %1110 }
 0x3bc   :  { %v647_v53 = vpop.xlane.xlu2 %646  ;;  %v452_v54 = vmul.f32 %v1111_v51, %v1099_v32  ;;  %v1113_v56 = vpop.eup %1112  ;;  %v819_v51 = vld [vmem:[#allocation10 + $0x18] sm:$0xff] }
 0x3bd   :  { %1114 = vrcp.f32 %v647_v53  ;;  %v553_v63 = vmul.f32 %v1113_v56, %v1540_v24  ;;  %v817_v53 = vld [vmem:[#allocation10 + $0x8] sm:$0xff] }
 0x3be   :  { %1017 = vmatmul.msk.f32.gmra.mxu2 %vm336_vm9, %v452_v54  ;;  %1116 = vrcp.f32 %v650_v57  ;;  %v816_v54 = vld [vmem:[#allocation10] sm:$0xff] }
 0x3c3   :  { %v1115_v60 = vpop.eup %1114 }
 0x3c4   :  { %v1070_v55 = vpop.permute.xlu1 %1069  ;;  %v1065_v58 = vpop.permute.xlu2 %1064  ;;  %v653_v3 = vmul.f32 %v1115_v60, %v1103_v36 }
 0x3c5   :  { %v1071_v59 = vunpack.i.l.bf16 %v1070_v55  ;;  %v1066_v61 = vunpack.i.l.bf16 %v1065_v58  ;;  %v1072_v62 = vunpack.i.h.bf16 %v1070_v55  ;;  %v1067_v1 = vunpack.i.h.bf16 %v1065_v58  ;;  %v1117_v4 = vpop.eup %1116 }
 0x3c6   :  { %v654_v5 = vmul.f32 %v1117_v4, %v1101_v33 }
 0x3c7   :  { %581 = vmatpush.msra.mxu0 %v1071_v59  ;;  %681 = vmatpush.msrb.mxu2 %v1066_v61 }
 0x3c9   :  { %582 = vmatpush.msra.mxu0 %v1072_v62  ;;  %682 = vmatpush.msrb.mxu2 %v1067_v1  ;;  %v1078_v1 = vld [vmem:[%s1656_s11] ss:$0 sm:$0xff] }
 0x3ca   :  { %1022 = vmatmul.msk.f32.vlgmr.msra.gmra.mxu0 %vm336_vm9, %v553_v63  ;;  %1028 = vmatmul.msk.f32.vlgmr.msrb.gmra.mxu2 %vm336_vm9, %v653_v3 }
 0x3cb   :  { %842 = vmatpush.msrb.mxu0 %v819_v51 }
 0x3cd   :  { %843 = vmatpush.msrb.mxu0 %v818_v52 }
 0x3cf   :  { %844 = vmatpush.msrb.mxu0 %v817_v53 }
 0x3d1   :  { %845 = vmatpush.msrb.mxu0 %v816_v54 }
 0x3d2   :  { %1029 = vmatmul.msk.f32.gmra.mxu2 %vm336_vm9, %v654_v5  ;;  %v1079_v5 = vld [vmem:[%s1657_s12] ss:$0 sm:$0xff] }
 0x3fd   :  { %v550_v6 = vpop.xlane.xlu2 %549 }
 0x3fe   :  { %1118 = vrcp.f32 %v550_v6 }
 0x404   :  { %v1119_v7 = vpop.eup %1118 }
 0x405   :  { %v554_v8 = vmul.f32 %v1119_v7, %v1105_v43 }
 0x407   :  { %1023 = vmatmul.msk.f32.gmra.mxu0 %vm336_vm9, %v554_v8 }
 0x425   :  { %v484_v9 = vpop.f32.mrf.mxu2 }
 0x426   :  { %692 = vrot.lane.b32.xlu1 %v484_v9, %s1286_s1 }
 0x427   :  { %v385_v13 = vpop.f32.mrf.mxu0 }
 0x441   :  { %v487_v14 = vpop.f32.mrf.mxu2 }
 0x447   :  { %v584_v15 = vpop.f32.mrf.mxu0 }
 0x448   :  { %700 = vrot.lane.b32.xlu1 %v584_v15, %s1295_s8 }
 0x44d   :  { %v684_v16 = vpop.f32.mrf.mxu2 }
 0x44e   :  { %708 = vrot.lane.b32.xlu0 %v684_v16, %s1296_s22 }
 0x450   :  { %694 = vrot.lane.b32.xlu1 %v487_v14, %s1286_s1 }
 0x455   :  { %v687_v18 = vpop.f32.mrf.mxu2 }
 0x484   :  { %v587_v17 = vpop.f32.mrf.mxu0 }
 0x485   :  { %702 = vrot.lane.b32.xlu1 %v587_v17, %s1295_s8 }
 0x48d   :  { %710 = vrot.lane.b32.xlu1 %v687_v18, %s1296_s22  ;;  %s1297_s22 = smov [#allocation11]  }
 0x48e   :  { %s983_s23 = sshll.u32 %s1297_s22, 4  ;;  %s984_s23 = int_to_ptr.vmem [resolvable:$true] %s983_s23 }
 0x498   :  { %v693_v23 = vpop.permute.xlu1 %692 }
 0x499   :  { %v714_v25 = vsel %vm296_vm8, %v382_v11, %v693_v23 }
 0x4ba   :  { %v701_v24 = vpop.permute.xlu1 %700 }
 0x4bb   :  { %v716_v26 = vsel %vm336_vm9, %v714_v25, %v701_v24 }
 0x4c0   :  { %v709_v27 = vpop.permute.xlu0 %708 }
 0x4c1   :  { %v719_v28 = vsel %vm718_vm10, %v716_v26, %v709_v27 }
 0x4c2   :  { %1030 = vmatmul.msk.f32.vlgmr.msrb.gmra.mxu3 %vm139_vm0, %v719_v28  ;;  %v695_v29 = vpop.permute.xlu1 %694 }
 0x4c3   :  { %v715_v31 = vsel %vm296_vm8, %v385_v13, %v695_v29  ;;  %v940_v29 = vld [vmem:[%s1660_s15 + $0x38] sm:$0xff] }
 0x4c4   :  { %960 = vmatpush.msrb.mxu1 %v940_v29 }
 0x4f7   :  { %v703_v30 = vpop.permute.xlu1 %702 }
 0x4f8   :  { %v717_v32 = vsel %vm336_vm9, %v715_v31, %v703_v30  ;;  %v939_v30 = vld [vmem:[%s1660_s15 + $0x30] sm:$0xff]  ;;  %v938_v31 = vld [vmem:[%s1660_s15 + $0x28] sm:$0xff] }
 0x4f9   :  { %961 = vmatpush.msrb.mxu1 %v939_v30 }
 0x4fb   :  { %962 = vmatpush.msrb.mxu1 %v938_v31 }
 0x4ff   :  { %v711_v33 = vpop.permute.xlu1 %710 }
 0x500   :  { %v720_v34 = vsel %vm718_vm10, %v717_v32, %v711_v33  ;;  %v937_v32 = vld [vmem:[%s1660_s15 + $0x20] sm:$0xff] }
 0x501   :  { %1031 = vmatmul.msk.f32.gmra.mxu3 %vm139_vm0, %v720_v34  ;;  %963 = vmatpush.msrb.mxu1 %v937_v32 }
 0x545   :  { %v752_v36 = vpop.f32.mrf.mxu3 }
 0x546   :  { %v753_v37 = vadd.f32 %v1077_v35, %v752_v36 }
 0x548   :  { %v1574_v38 = vadd.f32 %v753_v37, %v1419_v2  ;;  %v935_v37 = vld [vmem:[%s1660_s15 + $0x10] sm:$0xff] }
 0x54a   :  { %v762_v39 = vsel %vm139_vm0, %v1574_v38, 0.0 }
 0x54b   :  { %763 = vadd.xlane.f32.xlu0 %v762_v39 }
 0x584   :  { %v755_v40 = vpop.f32.mrf.mxu3 }
 0x585   :  { %v756_v41 = vadd.f32 %v1077_v35, %v755_v40  ;;  %v936_v35 = vld [vmem:[%s1660_s15 + $0x18] sm:$0xff] }
 0x586   :  { %964 = vmatpush.msrb.mxu1 %v936_v35 }
 0x587   :  { %v1579_v42 = vadd.f32 %v756_v41, %v1415_v0 }
 0x588   :  { %965 = vmatpush.msrb.mxu1 %v935_v37 }
 0x589   :  { %v765_v43 = vsel %vm139_vm0, %v1579_v42, 0.0 }
 0x58a   :  { %766 = vadd.xlane.f32.xlu2 %v765_v43  ;;  %v934_v43 = vld [vmem:[%s1660_s15 + $0x8] sm:$0xff] }
 0x58b   :  { %966 = vmatpush.msrb.mxu1 %v934_v43  ;;  %v1081_v43 = vld [vmem:[%s1661_s16] ss:$0 sm:$0xff] }
 0x5be   :  { %v764_v44 = vpop.xlane.xlu0 %763 }
 0x5bf   :  { %v768_v45 = vmul.f32 %v764_v44, %v1423_v10  ;;  %v933_v44 = vld [vmem:[%s1660_s15] sm:$0xff] }
 0x5c0   :  { %967 = vmatpush.msrb.mxu1 %v933_v44 }
 0x5c1   :  { %v770_v46 = vsub.f32 %v1574_v38, %v768_v45 }
 0x5c3   :  { %v772_v2 = vmul.f32 %v770_v46, %v770_v46 }
 0x5c5   :  { %v774_v47 = vsel %vm139_vm0, %v772_v2, 0.0 }
 0x5c6   :  { %775 = vadd.xlane.f32.xlu1 %v774_v47 }
 0x5fd   :  { %v767_v48 = vpop.xlane.xlu2 %766 }
 0x5fe   :  { %v769_v49 = vmul.f32 %v767_v48, %v1423_v10 }
 0x600   :  { %v771_v50 = vsub.f32 %v1579_v42, %v769_v49 }
 0x602   :  { %v773_v0 = vmul.f32 %v771_v50, %v771_v50 }
 0x604   :  { %v777_v12 = vsel %vm139_vm0, %v773_v0, 0.0 }
 0x605   :  { %778 = vadd.xlane.f32.xlu2 %v777_v12 }
 0x639   :  { %v776_v55 = vpop.xlane.xlu1 %775 }
 0x63a   :  { %v780_v56 = vmul.f32 %v776_v55, %v1423_v10 }
 0x63c   :  { %v782_v57 = vadd.f32 1e-05, %v780_v56 }
 0x63e   :  { %1120 = vrsqrt.f32 %v782_v57  ;;  %vm790_vm12 = vweird.f32 %v782_v57 }
 0x644   :  { %v1121_v58 = vpop.eup %1120 }
 0x645   :  { %v785_v59 = vmul.f32 %v1121_v58, %v782_v57  ;;  %vm791_vm11 = vweird.f32 %v1121_v58 }
 0x646   :  { %vm792_vm13 = vmor %vm790_vm12, %vm791_vm11 }
 0x647   :  { %v786_v60 = vmul.f32 %v1121_v58, %v785_v59 }
 0x649   :  { %v787_v61 = vmul.f32 0.5, %v786_v60 }
 0x64b   :  { %v788_v62 = vsub.f32 1.5, %v787_v61 }
 0x64d   :  { %v789_v63 = vmul.f32 %v1121_v58, %v788_v62 }
 0x64f   :  { %v793_v3 = vsel %vm792_vm13, %v1121_v58, %v789_v63 }
 0x650   :  { %v804_v4 = vmul.f32 %v793_v3, %v770_v46 }
 0x652   :  { %v809_v6 = vmul.f32 %v1078_v1, %v804_v4 }
 0x654   :  { %v814_v7 = vadd.f32 %v1079_v5, %v809_v6 }
 0x656   :  { %1032 = vmatmul.msk.f32.vlgmr.msrb.gmra.mxu0 %vm139_vm0, %v814_v7 }
 0x678   :  { %v779_v8 = vpop.xlane.xlu2 %778 }
 0x679   :  { %v781_v9 = vmul.f32 %v779_v8, %v1423_v10  ;;  %v1602_v10 = vld [vmem:[%s1659_s14] ss:$0 sm:$0xff] }
 0x67b   :  { %v783_v11 = vadd.f32 1e-05, %v781_v9 }
 0x67d   :  { %1122 = vrsqrt.f32 %v783_v11  ;;  %vm800_vm15 = vweird.f32 %v783_v11 }
 0x683   :  { %v1123_v13 = vpop.eup %1122 }
 0x684   :  { %v795_v14 = vmul.f32 %v1123_v13, %v783_v11  ;;  %vm801_vm14 = vweird.f32 %v1123_v13 }
 0x685   :  { %vm802_vm1 = vmor %vm800_vm15, %vm801_vm14 }
 0x686   :  { %v796_v15 = vmul.f32 %v1123_v13, %v795_v14 }
 0x688   :  { %v797_v16 = vmul.f32 0.5, %v796_v15 }
 0x68a   :  { %v798_v17 = vsub.f32 1.5, %v797_v16 }
 0x68c   :  { %v799_v18 = vmul.f32 %v1123_v13, %v798_v17 }
 0x68e   :  { %v803_v19 = vsel %vm802_vm1, %v1123_v13, %v799_v18 }
 0x68f   :  { %v805_v20 = vmul.f32 %v803_v19, %v771_v50 }
 0x691   :  { %v810_v21 = vmul.f32 %v1078_v1, %v805_v20 }
 0x693   :  { %v815_v22 = vadd.f32 %v1079_v5, %v810_v21 }
 0x695   :  { %1033 = vmatmul.msk.f32.gmra.mxu0 %vm139_vm0, %v815_v22 }
 0x6d3   :  { %v847_v23 = vpop.f32.mrf.mxu0 }
 0x6d4   :  { %v848_v24 = vadd.f32 %v1602_v10, %v847_v23 }
 0x6d6   :  { %v855_v25 = vmul.f32 0.70710677, %v848_v24  ;;  %v853_v63 = vmul.f32 0.5, %v848_v24 }
 0x6d8   :  { %v857_v26 = vand.u32 2147483647, %v855_v25  ;;  %vm923_vm6 = vcmp.ge.f32.partialorder %v855_v25, 0.0 }
 0x6da   :  { %v859_v27 = vmul.f32 0.3275911, %v857_v26  ;;  %v911_v48 = vsub.f32 0.0, %v857_v26 }
 0x6dc   :  { %v861_v28 = vadd.f32 1.0, %v859_v27  ;;  %v913_v0 = vmul.f32 %v911_v48, %v857_v26 }
 0x6de   :  { %1124 = vrcp.f32 %v861_v28  ;;  %v874_v39 = vand.u32 2147483648, %v861_v28  ;;  %v872_v41 = vand.u32 2147483647, %v861_v28  ;;  %vm868_vm3 = vweird.f32 %v861_v28 }
 0x6df   :  { %v915_v52 = vmul.f32 1.442695, %v913_v0 }
 0x6e0   :  { %v875_v46 = vor.u32 1.1754944e-38, %v874_v39  ;;  %vm873_vm5 = vcmp.eq.f32.partialorder %v872_v41, 8.507059e+37 }
 0x6e1   :  { %1126 = vpow2.f32 %v915_v52 }
 0x6e4   :  { %v1125_v33 = vpop.eup %1124 }
 0x6e5   :  { %v864_v34 = vmul.f32 %v1125_v33, %v861_v28  ;;  %vm869_vm2 = vweird.f32 %v1125_v33 }
 0x6e6   :  { %vm870_vm4 = vmor %vm868_vm3, %vm869_vm2 }
 0x6e7   :  { %v865_v36 = vsub.f32 1.0, %v864_v34  ;;  %v1127_v58 = vpop.eup %1126 }
 0x6e9   :  { %v866_v40 = vmul.f32 %v1125_v33, %v865_v36 }
 0x6eb   :  { %v867_v45 = vadd.f32 %v1125_v33, %v866_v40 }
 0x6ed   :  { %v871_v2 = vsel %vm870_vm4, %v1125_v33, %v867_v45 }
 0x6ee   :  { %v876_v47 = vsel %vm873_vm5, %v875_v46, %v871_v2 }
 0x6ef   :  { %v893_v49 = vmul.f32 1.0614054, %v876_v47 }
 0x6f1   :  { %v895_v50 = vadd.f32 -1.4531521, %v893_v49 }
 0x6f3   :  { %v897_v12 = vmul.f32 %v895_v50, %v876_v47 }
 0x6f5   :  { %v899_v51 = vadd.f32 1.4214138, %v897_v12 }
 0x6f7   :  { %v901_v53 = vmul.f32 %v899_v51, %v876_v47 }
 0x6f9   :  { %v903_v54 = vadd.f32 -0.28449672, %v901_v53 }
 0x6fb   :  { %v905_v55 = vmul.f32 %v903_v54, %v876_v47 }
 0x6fd   :  { %v907_v56 = vadd.f32 0.2548296, %v905_v55 }
 0x6ff   :  { %v909_v57 = vmul.f32 %v907_v56, %v876_v47 }
 0x701   :  { %v919_v59 = vmul.f32 %v1127_v58, %v909_v57 }
 0x703   :  { %v921_v60 = vsub.f32 1.0, %v919_v59 }
 0x705   :  { %v925_v61 = vsub.f32 0.0, %v921_v60 }
 0x707   :  { %v927_v62 = vsel %vm923_vm6, %v921_v60, %v925_v61 }
 0x708   :  { %v929_v1 = vadd.f32 1.0, %v927_v62 }
 0x70a   :  { %v931_v3 = vmul.f32 %v929_v1, %v853_v63 }
 0x70c   :  { %1034 = vmatmul.msk.f32.vlgmr.msrb.gmra.mxu1 %vm945_vm7, %v931_v3 }
 0x712   :  { %v850_v4 = vpop.f32.mrf.mxu0 }
 0x713   :  { %v851_v5 = vadd.f32 %v1602_v10, %v850_v4 }
 0x715   :  { %v856_v6 = vmul.f32 0.70710677, %v851_v5  ;;  %v854_v39 = vmul.f32 0.5, %v851_v5 }
 0x717   :  { %v858_v7 = vand.u32 2147483647, %v856_v6  ;;  %vm924_vm12 = vcmp.ge.f32.partialorder %v856_v6, 0.0 }
 0x719   :  { %v860_v8 = vmul.f32 0.3275911, %v858_v7  ;;  %v912_v21 = vsub.f32 0.0, %v858_v7 }
 0x71b   :  { %v862_v9 = vadd.f32 1.0, %v860_v8  ;;  %v914_v24 = vmul.f32 %v912_v21, %v858_v7 }
 0x71d   :  { %1128 = vrcp.f32 %v862_v9  ;;  %v889_v15 = vand.u32 2147483648, %v862_v9  ;;  %v887_v17 = vand.u32 2147483647, %v862_v9  ;;  %vm883_vm9 = vweird.f32 %v862_v9 }
 0x71e   :  { %v917_v27 = vmul.f32 1.442695, %v914_v24 }
 0x71f   :  { %v890_v19 = vor.u32 1.1754944e-38, %v889_v15  ;;  %vm888_vm11 = vcmp.eq.f32.partialorder %v887_v17, 8.507059e+37 }
 0x720   :  { %1130 = vpow2.f32 %v917_v27 }
 0x723   :  { %v1129_v11 = vpop.eup %1128 }
 0x724   :  { %v879_v13 = vmul.f32 %v1129_v11, %v862_v9  ;;  %vm884_vm8 = vweird.f32 %v1129_v11 }
 0x725   :  { %vm885_vm10 = vmor %vm883_vm9, %vm884_vm8 }
 0x726   :  { %v880_v14 = vsub.f32 1.0, %v879_v13  ;;  %v1131_v33 = vpop.eup %1130 }
 0x728   :  { %v881_v16 = vmul.f32 %v1129_v11, %v880_v14 }
 0x72a   :  { %v882_v18 = vadd.f32 %v1129_v11, %v881_v16 }
 0x72c   :  { %v886_v20 = vsel %vm885_vm10, %v1129_v11, %v882_v18 }
 0x72d   :  { %v891_v22 = vsel %vm888_vm11, %v890_v19, %v886_v20 }
 0x72e   :  { %v894_v10 = vmul.f32 1.0614054, %v891_v22 }
 0x730   :  { %v896_v23 = vadd.f32 -1.4531521, %v894_v10 }
 0x732   :  { %v898_v25 = vmul.f32 %v896_v23, %v891_v22 }
 0x734   :  { %v900_v26 = vadd.f32 1.4214138, %v898_v25 }
 0x736   :  { %v902_v28 = vmul.f32 %v900_v26, %v891_v22 }
 0x738   :  { %v904_v29 = vadd.f32 -0.28449672, %v902_v28 }
 0x73a   :  { %v906_v30 = vmul.f32 %v904_v29, %v891_v22 }
 0x73c   :  { %v908_v31 = vadd.f32 0.2548296, %v906_v30 }
 0x73e   :  { %v910_v32 = vmul.f32 %v908_v31, %v891_v22 }
 0x740   :  { %v920_v34 = vmul.f32 %v1131_v33, %v910_v32 }
 0x742   :  { %v922_v35 = vsub.f32 1.0, %v920_v34 }
 0x744   :  { %v926_v36 = vsub.f32 0.0, %v922_v35 }
 0x746   :  { %v928_v37 = vsel %vm924_vm12, %v922_v35, %v926_v36 }
 0x747   :  { %v930_v40 = vadd.f32 1.0, %v928_v37 }
 0x749   :  { %v932_v41 = vmul.f32 %v930_v40, %v854_v39 }
 0x74b   :  { %1035 = vmatmul.msk.f32.gmra.mxu1 %vm945_vm7, %v932_v41 }
 0x789   :  { %v969_v44 = vpop.f32.mrf.mxu1 }
 0x78a   :  { %v970_v45 = vadd.f32 %v1081_v43, %v969_v44 }
 0x78c   :  { %v975_v46 = vadd.f32 %v970_v45, %v1574_v38 }
 0x78e   :  { %977 = vst.msk [vmem:[#allocation11] sm:$0xff] %vm139_vm0, %v975_v46 }
 0x7c8   :  { %v972_v2 = vpop.f32.mrf.mxu1 }
 0x7c9   :  { %v973_v47 = vadd.f32 %v1081_v43, %v972_v2 }
 0x7cb   :  { %v976_v48 = vadd.f32 %v973_v47, %v1579_v42 }
 0x7cd   :  { %978 = vst.msk [vmem:[#allocation11 + $0x8] sm:$0xff] %vm139_vm0, %v976_v48 }
 0x7ce   :  { %991 = dma.vmem_to_hbm [thread:$0]  %s984_s23, 256, %s986_s21, [#allocation4], %s1285_s19, %s1285_s19, %s1286_s1  }
 0x7cf   :  { %1282 = dma.done.wait [#allocation4], 256  }
 0x7d0   :  { %1283 = vsyncadd [#allocation4], 4294967040 }
 0x7d1   :  { %996 = vsyncpa [#allocation3], 1 }
 0x7d2   :  { %997 = vsyncpa [#allocation6], 1 }
 0x7d3   :  { %998 = vsyncpa [#allocation9], 1 }
 0x7d4   :  { %999 = vsyncpa [#allocation4], 1 }

</bundles_post_ra>
